<compile_context>
chip_gen: v5e
topology: v5e:2x2
jax: 0.10.0
libtpu: 0.0.40
codegen_flags: <defaults>
</compile_context>

<pallas_src>
import functools

import jax
import jax.numpy as jnp
from jax import lax
from jax.experimental import pallas as pl
from jax.experimental.pallas import tpu as pltpu


_LANE = 128
_SUBLANE = 8
# ~2 MiB per f32 input tile (1 MiB for bf16).  2 inputs x 2 pipeline buffers
# plus temporaries stays well under the scoped-VMEM limits on v5e/v6e/v7x
# while amortizing the ~0.35us per-grid-step overhead of this mem-bound kernel.
_TARGET_TILE_ELEMS = 512 * 1024


def _round_up(x, m):
    return ((x + m - 1) // m) * m


def _choose_tiles(rows, cols):
    """Pick (tile_r, tile_c): multiples of (8, 128), ~_TARGET_TILE_ELEMS elems."""
    rows_t = _round_up(rows, _SUBLANE)
    cols_t = _round_up(cols, _LANE)
    tile_r = min(rows_t, 256)
    tile_c = min(cols_t,
                 _round_up(max(_TARGET_TILE_ELEMS // tile_r, _LANE), _LANE))
    if tile_c == cols_t:
        # Whole column extent fits in one tile: spend the element budget on
        # rows instead (helps tall-skinny inputs).
        tile_r = min(rows_t,
                     _round_up(max(_TARGET_TILE_ELEMS // tile_c, _SUBLANE),
                               _SUBLANE))
    return tile_r, tile_c


def _edge_mask(r, c, rows, cols, tile_r, tile_c):
    """Validity mask for ragged edge blocks (None if the grid divides evenly)."""
    need_r = (rows % tile_r) != 0
    need_c = (cols % tile_c) != 0
    if not (need_r or need_c):
        return None
    valid = None
    if need_r:
        ri = lax.broadcasted_iota(jnp.int32, (tile_r, tile_c), 0)
        valid = (r * tile_r + ri) < rows
    if need_c:
        ci = lax.broadcasted_iota(jnp.int32, (tile_r, tile_c), 1)
        vc = (c * tile_c + ci) < cols
        valid = vc if valid is None else (valid & vc)
    return valid


def _fold_to_8x128(x, tile_r, tile_c):
    """Sum a (tile_r, tile_c) f32 tile down to (8, 128) per-lane partial sums.

    Uses only 128/8-aligned static slices + elementwise adds: pure VPU work,
    no reshapes and no per-step cross-lane (XLU) reduction.
    """
    part = x[:, 0:_LANE]
    for g in range(1, tile_c // _LANE):
        part = part + x[:, g * _LANE:(g + 1) * _LANE]
    out = part[0:_SUBLANE, :]
    for g in range(1, tile_r // _SUBLANE):
        out = out + part[g * _SUBLANE:(g + 1) * _SUBLANE, :]
    return out


# ---------------------------------------------------------------------------
# Kernels
# ---------------------------------------------------------------------------
def _sq_sum_kernel(p_ref, t_ref, o_ref, *, rows, cols, tile_r, tile_c):
    r = pl.program_id(0)
    c = pl.program_id(1)

    @pl.when(c == 0)
    def _():
        o_ref[...] = jnp.zeros_like(o_ref)

    d = p_ref[...].astype(jnp.float32) - t_ref[...].astype(jnp.float32)
    sq = d * d
    valid = _edge_mask(r, c, rows, cols, tile_r, tile_c)
    if valid is not None:
        sq = jnp.where(valid, sq, 0.0)
    # Output block index is constant along the (arbitrary) column axis, so the
    # (8,128) block stays resident in VMEM and acts as the accumulator.
    o_ref[...] += _fold_to_8x128(sq, tile_r, tile_c)


def _masked_sq_sum_kernel(p_ref, t_ref, m_ref, osq_ref, ocnt_ref, *,
                          rows, cols, tile_r, tile_c):
    r = pl.program_id(0)
    c = pl.program_id(1)

    @pl.when(c == 0)
    def _():
        osq_ref[...] = jnp.zeros_like(osq_ref)
        ocnt_ref[...] = jnp.zeros_like(ocnt_ref)

    d = p_ref[...].astype(jnp.float32) - t_ref[...].astype(jnp.float32)
    w = m_ref[...]
    valid = _edge_mask(r, c, rows, cols, tile_r, tile_c)
    if valid is not None:
        w = jnp.where(valid, w, 0.0)
    osq_ref[...] += _fold_to_8x128(d * d * w, tile_r, tile_c)
    ocnt_ref[...] += _fold_to_8x128(w, tile_r, tile_c)


# ---------------------------------------------------------------------------
# Wrappers
# ---------------------------------------------------------------------------
def _as_2d(x):
    # Last dim -> lanes, everything else -> rows (free reshape of a contiguous
    # array; no data movement).
    if x.ndim >= 2:
        return x.reshape(-1, x.shape[-1])
    return x.reshape(1, -1)


def _mosaic_params():
    return pltpu.CompilerParams(
        dimension_semantics=("parallel", "arbitrary"),
        vmem_limit_bytes=32 * 1024 * 1024,
    )


@jax.jit
def _pallas_sq_sum(pred, target):
    """Returns (sum((pred-target)^2), element_count) over all elements."""
    assert pred.shape == target.shape, "pred/target shape mismatch"
    p2 = _as_2d(pred)
    t2 = _as_2d(target)
    rows, cols = p2.shape
    tile_r, tile_c = _choose_tiles(rows, cols)
    n_rb = pl.cdiv(rows, tile_r)
    n_cb = pl.cdiv(cols, tile_c)

    kernel = functools.partial(_sq_sum_kernel, rows=rows, cols=cols,
                               tile_r=tile_r, tile_c=tile_c)
    partials = pl.pallas_call(
        kernel,
        out_shape=jax.ShapeDtypeStruct((n_rb * _SUBLANE, _LANE), jnp.float32),
        grid_spec=pltpu.PrefetchScalarGridSpec(
            num_scalar_prefetch=0,
            grid=(n_rb, n_cb),
            in_specs=[
                pl.BlockSpec((tile_r, tile_c), lambda r, c: (r, c)),
                pl.BlockSpec((tile_r, tile_c), lambda r, c: (r, c)),
            ],
            out_specs=pl.BlockSpec((_SUBLANE, _LANE), lambda r, c: (r, 0)),
        ),
        compiler_params=_mosaic_params(),
    )(p2, t2)
    return jnp.sum(partials), jnp.float32(pred.size)


@jax.jit
def _pallas_masked_sq_sum(pred, target, mask):
    """Returns (sum((pred-target)^2 * mask), sum(mask)) in one HBM pass."""
    assert pred.shape == target.shape == mask.shape
    p2 = _as_2d(pred)
    t2 = _as_2d(target)
    m2 = _as_2d(mask).astype(jnp.float32)
    rows, cols = p2.shape
    tile_r, tile_c = _choose_tiles(rows, cols)
    n_rb = pl.cdiv(rows, tile_r)
    n_cb = pl.cdiv(cols, tile_c)

    kernel = functools.partial(_masked_sq_sum_kernel, rows=rows, cols=cols,
                               tile_r=tile_r, tile_c=tile_c)
    part_shape = jax.ShapeDtypeStruct((n_rb * _SUBLANE, _LANE), jnp.float32)
    sq_parts, cnt_parts = pl.pallas_call(
        kernel,
        out_shape=(part_shape, part_shape),
        grid_spec=pltpu.PrefetchScalarGridSpec(
            num_scalar_prefetch=0,
            grid=(n_rb, n_cb),
            in_specs=[
                pl.BlockSpec((tile_r, tile_c), lambda r, c: (r, c)),
                pl.BlockSpec((tile_r, tile_c), lambda r, c: (r, c)),
                pl.BlockSpec((tile_r, tile_c), lambda r, c: (r, c)),
            ],
            out_specs=[
                pl.BlockSpec((_SUBLANE, _LANE), lambda r, c: (r, 0)),
                pl.BlockSpec((_SUBLANE, _LANE), lambda r, c: (r, 0)),
            ],
        ),
        compiler_params=_mosaic_params(),
    )(p2, t2, m2)
    return jnp.sum(sq_parts), jnp.sum(cnt_parts)


# ---------------------------------------------------------------------------
# Python-side mirror of the PyTorch modules
# ---------------------------------------------------------------------------
class LossModule:
    def __init__(self, name: str, weight: float = 1.0, decay=1.0):
        self.name = name
        self.decay = float(decay)
        self.master_weight = weight
        # weight buffer kept as host-side state (mirrors register_buffer)
        self.weight = jnp.asarray(float(weight), dtype=jnp.float32)

    def decay_weight(self):
        if self.decay != 1.0:
            self.weight = self.weight * self.decay
        elif self.decay == 1.0 and float(self.weight) != self.master_weight:
            self.weight = jnp.asarray(float(self.master_weight),
                                      dtype=self.weight.dtype)

    def forward(self, info, *args, **kwargs):
        raise NotImplementedError

    def __call__(self, info, *args, **kwargs):
        return self.forward(info, *args, **kwargs)


class MSELoss(LossModule):
    """weight * mean((info[key_a] - info[key_b])^2), optionally masked."""

    def __init__(self, key_a: str, key_b: str, weight: float = 1.0,
                 mask_key: str = None, name: str = 'mse_loss', decay=1.0):
        super().__init__(name=name, weight=weight, decay=decay)
        self.key_a = key_a
        self.key_b = key_b
        self.mask_key = mask_key

    def forward(self, info):
        a = info[self.key_a]
        b = info[self.key_b]
        if (self.mask_key is not None and self.mask_key in info
                and info[self.mask_key] is not None):
            mask = info[self.mask_key]
            if mask.ndim == 2 and a.ndim == 3:
                mask = mask[:, None, :]            # unsqueeze channel dim
            if mask.shape[1] != a.shape[1]:        # torch: mask.repeat(1, C, 1)
                mask = jnp.broadcast_to(
                    mask, (mask.shape[0], a.shape[1], mask.shape[2]))
            sq_sum, cnt = _pallas_masked_sq_sum(a, b, mask)
            mse = sq_sum / cnt
        else:
            sq_sum, n = _pallas_sq_sum(a, b)
            mse = sq_sum / n
        self.decay_weight()
        return self.weight * mse


# ---------------------------------------------------------------------------
if __name__ == "__main__":
    key = jax.random.PRNGKey(0)
    k1, k2, k3, k4, k5, k6 = jax.random.split(key, 6)

    # --- 1) standard MSE, aligned shape (B=2, C=4, T=256) -------------------
    B, C, T = 2, 4, 256
    output = jax.random.normal(k1, (B, C, T), dtype=jnp.float32)
    targets = jax.random.normal(k2, (B, C, T), dtype=jnp.float32)
    mse = MSELoss(key_a="output", key_b="targets", weight=0.5, name="mse_loss")
    loss = jax.block_until_ready(mse({"output": output, "targets": targets}))
    ref = 0.5 * jnp.mean((output - targets) ** 2)
    assert jnp.allclose(loss, ref, rtol=1e-5, atol=1e-6), (loss, ref)

    # --- 2) ragged shape: no jnp.pad, in-kernel edge masking ----------------
    o_r = jax.random.normal(k3, (2, 3, 200), dtype=jnp.float32)
    t_r = jax.random.normal(k4, (2, 3, 200), dtype=jnp.float32)
    mse2 = MSELoss(key_a="output", key_b="targets", weight=1.0)
    loss2 = jax.block_until_ready(mse2({"output": o_r, "targets": t_r}))
    ref2 = jnp.mean((o_r - t_r) ** 2)
    assert jnp.allclose(loss2, ref2, rtol=1e-5, atol=1e-6), (loss2, ref2)

    # --- 3) masked MSE (2-D mask broadcast over channels, as in the spec) ---
    mask = jax.random.bernoulli(k5, 0.5, (B, T))
    mask = mask.at[0, 0].set(True)     # ensure a non-empty selection
    mse3 = MSELoss(key_a="output", key_b="targets", weight=1.0,
                   mask_key="padding_mask")
    loss3 = jax.block_until_ready(
        mse3({"output": output, "targets": targets, "padding_mask": mask}))
    m3 = jnp.broadcast_to(mask[:, None, :], output.shape)
    sq = (output - targets) ** 2
    ref3 = jnp.sum(jnp.where(m3, sq, 0.0)) / jnp.sum(m3.astype(jnp.float32))
    assert jnp.allclose(loss3, ref3, rtol=1e-5, atol=1e-6), (loss3, ref3)

    # --- 4) bf16 inputs stay bf16 in HBM; accumulation is f32 ---------------
    ob = jax.random.normal(k6, (2, 4, 384), dtype=jnp.float32).astype(jnp.bfloat16)
    tb = (ob * 0.5 + 0.25).astype(jnp.bfloat16)
    mse4 = MSELoss(key_a="output", key_b="targets", weight=1.0)
    loss4 = jax.block_until_ready(mse4({"output": ob, "targets": tb}))
    ref4 = jnp.mean((ob.astype(jnp.float32) - tb.astype(jnp.float32)) ** 2)
    assert jnp.allclose(loss4, ref4, rtol=1e-5, atol=1e-6), (loss4, ref4)

    print("KERNEL_OK")
</pallas_src>

<mosaic_0001>
module attributes {stable_mosaic.version = 11 : i64} {
  func.func @_sq_sum_kernel(%arg0: i32, %arg1: i32, %arg2: memref<8x256xf32, #tpu.memory_space<vmem>>, %arg3: memref<8x256xf32, #tpu.memory_space<vmem>>, %arg4: memref<8x128xf32, #tpu.memory_space<vmem>>) attributes {dimension_semantics = [#tpu.dimension_semantics<parallel>, #tpu.dimension_semantics<arbitrary>], iteration_bounds = array<i64: 1, 1>, scalar_prefetch = 0 : i64, scratch_operands = 0 : i64, tpu.core_type = #tpu.core_type<tc>, window_params = [{transform_indices = @transform_0, window_bounds = array<i64: 8, 256>}, {transform_indices = @transform_1, window_bounds = array<i64: 8, 256>}, {transform_indices = @transform_2, window_bounds = array<i64: 8, 128>}]} {
    %c0_i32 = arith.constant 0 : i32
    %0 = arith.cmpi eq, %arg1, %c0_i32 : i32
    %1 = arith.extui %0 : i1 to i32
    %c0_i32_0 = arith.constant 0 : i32
    %2 = arith.cmpi ne, %1, %c0_i32_0 : i32
    scf.if %2 {
      %cst = arith.constant 0.000000e+00 : f32
      %13 = vector.broadcast %cst : f32 to vector<8x128xf32>
      %c0_8 = arith.constant 0 : index
      %c0_9 = arith.constant 0 : index
      %14 = vector.load %arg4[%c0_8, %c0_9] : memref<8x128xf32, #tpu.memory_space<vmem>>, vector<8x128xf32>
      tpu.vector_store %arg4[%c0_8, %c0_9], %13 {strides = array<i32>} : memref<8x128xf32, #tpu.memory_space<vmem>>, vector<8x128xf32>,
    } else {
    }
    %c0 = arith.constant 0 : index
    %c0_1 = arith.constant 0 : index
    %3 = vector.load %arg2[%c0, %c0_1] : memref<8x256xf32, #tpu.memory_space<vmem>>, vector<8x256xf32>
    %c0_2 = arith.constant 0 : index
    %c0_3 = arith.constant 0 : index
    %4 = vector.load %arg3[%c0_2, %c0_3] : memref<8x256xf32, #tpu.memory_space<vmem>>, vector<8x256xf32>
    %5 = arith.subf %3, %4 : vector<8x256xf32>
    %6 = arith.mulf %5, %5 : vector<8x256xf32>
    %c0_4 = arith.constant 0 : index
    %c0_5 = arith.constant 0 : index
    %7 = vector.load %arg4[%c0_4, %c0_5] : memref<8x128xf32, #tpu.memory_space<vmem>>, vector<8x128xf32>
    %8 = vector.extract_strided_slice %6 {offsets = [0, 0], sizes = [8, 128], strides = [1, 1]} : vector<8x256xf32> to vector<8x128xf32>
    %9 = vector.extract_strided_slice %6 {offsets = [0, 128], sizes = [8, 128], strides = [1, 1]} : vector<8x256xf32> to vector<8x128xf32>
    %10 = arith.addf %8, %9 : vector<8x128xf32>
    %11 = arith.addf %7, %10 : vector<8x128xf32>
    %c0_6 = arith.constant 0 : index
    %c0_7 = arith.constant 0 : index
    %12 = vector.load %arg4[%c0_6, %c0_7] : memref<8x128xf32, #tpu.memory_space<vmem>>, vector<8x128xf32>
    tpu.vector_store %arg4[%c0_6, %c0_7], %11 {strides = array<i32>} : memref<8x128xf32, #tpu.memory_space<vmem>>, vector<8x128xf32>,
    return
  }
  func.func @transform_0(%arg0: i32, %arg1: i32) -> (i32, i32) {
    %c0_i32 = arith.constant 0 : i32
    return %arg0, %arg1 : i32, i32
  }
  func.func @transform_1(%arg0: i32, %arg1: i32) -> (i32, i32) {
    %c0_i32 = arith.constant 0 : i32
    return %arg0, %arg1 : i32, i32
  }
  func.func @transform_2(%arg0: i32, %arg1: i32) -> (i32, i32) {
    %c0_i32 = arith.constant 0 : i32
    %c0_i32_0 = arith.constant 0 : i32
    return %arg0, %c0_i32 : i32, i32
  }
}

</mosaic_0001>

<bundles_post_ra>
// kernel: _pallas_sq_sum.1
= control target key start
LH: loop header
LB: loop body
LE: loop exit
PB: predicated region body
PF: predicated region fallthrough
CT: control target
= control target key end

     0   :  { %s63_s0 = inlined_call_operand.vmem [shape: f32[8,256], index: 0, kind: input, shape index: {}]   ;;  %s64_s1 = inlined_call_operand.vmem [shape: f32[8,256], index: 1, kind: input, shape index: {}]   ;;  %s65_s2 = inlined_call_operand.vmem [shape: f32[8,128], index: 2, kind: output, shape index: {}]  }
   0x1   :  { %v16_v0 = vld [vmem:[%s63_s0] sm:$0xff]  ;;  %v17_v1 = vld [vmem:[%s63_s0 + $0x8] sm:$0xff] }
   0x2   :  { %v18_v2 = vld [vmem:[%s64_s1] sm:$0xff]  ;;  %v19_v3 = vld [vmem:[%s64_s1 + $0x8] sm:$0xff] }
   0x3   :  { %v20_v4 = vsub.f32 %v16_v0, %v18_v2  ;;  %v21_v5 = vsub.f32 %v17_v1, %v19_v3 }
   0x5   :  { %v22_v6 = vmul.f32 %v20_v4, %v20_v4  ;;  %v23_v7 = vmul.f32 %v21_v5, %v21_v5 }
   0x7   :  { %v25_v8 = vadd.f32 %v23_v7, %v22_v6 }
   0x9   :  { %27 = vst [vmem:[%s65_s2] sm:$0xff] %v25_v8 }

</bundles_post_ra>
